<compile_context>
chip_gen: v7x
topology: tpu7x:2x2x1
jax: 0.10.0
libtpu: 0.0.40
codegen_flags: <defaults>
</compile_context>

<pallas_src>
import functools
import math

import jax
import jax.numpy as jnp
from jax import lax
from jax.experimental import pallas as pl
from jax.experimental.pallas import tpu as pltpu

EPS = 1e-5


# --------------------------------------------------------------------- helpers ----
def _vmem_limit_bytes():
    """Per-generation VMEM budget: ~100 MiB on 128-MiB parts (v5e/v6e), ~44 MiB on v7x."""
    cap = 64 * 1024 * 1024
    try:
        cap = int(getattr(pltpu.get_tpu_info(), "vmem_capacity_bytes", cap) or cap)
    except Exception:
        pass
    if cap >= 96 * 1024 * 1024:
        return 100 * 1024 * 1024
    return int(cap * 0.70)


def _pick_lane_tile(N, L, target_lanes):
    """Lane tile = a group of whole batch rows: a multiple of L, a multiple of 128
    (unless it covers the whole N*L extent), and it must divide N*L so that no partial
    tile pollutes the BatchNorm statistics."""
    NL = N * L
    if NL <= target_lanes:
        return NL
    step = L * (128 // math.gcd(L, 128))          # lcm(L, 128)
    if NL % step != 0:
        return NL                                  # fall back to a single resident tile
    k = max(1, target_lanes // step)
    while NL % (k * step) != 0:
        k -= 1
    return k * step


def _im2col3(v, L):
    """v: (C, TL) f32, TL a multiple of L (whole batch rows).  Returns the (3C, TL)
    im2col for a k=3 / padding=1 / stride=1 conv: rows [x[l-1]; x[l]; x[l+1]] with zeros
    at each per-batch edge.  Shifts use pltpu.roll (XLU) when the tile is lane-aligned;
    wraparound / cross-batch leakage is removed by the iota%L edge mask either way."""
    C, TL = v.shape
    pos = lax.broadcasted_iota(jnp.int32, (C, TL), 1) % L
    zero = jnp.zeros_like(v)
    if TL % 128 == 0:
        lft = pltpu.roll(v, shift=1, axis=1)        # lane p <- v[p-1]
        rgt = pltpu.roll(v, shift=TL - 1, axis=1)   # lane p <- v[p+1]
    else:
        # tiny, non-lane-aligned single tile: slice+concat fallback (cost negligible here)
        zc = jnp.zeros((C, 1), v.dtype)
        lft = jnp.concatenate([zc, v[:, : TL - 1]], axis=1)
        rgt = jnp.concatenate([v[:, 1:], zc], axis=1)
    left = jnp.where(pos == 0, zero, lft)
    right = jnp.where(pos == L - 1, zero, rgt)
    return jnp.concatenate([left, v, right], axis=0)


def _partial_stats(h):
    """Per-channel (sum, sumsq) over the lane axis of one tile -> (C, 2) f32."""
    return jnp.concatenate(
        [jnp.sum(h, axis=1, keepdims=True), jnp.sum(h * h, axis=1, keepdims=True)], axis=1)


def _fold_bn(stats, gamma, beta, count):
    """stats: (C, 2) summed over all tiles.  Returns per-channel (scale, shift) as (C, 1)
    so BN becomes a single fused multiply-add: h * scale + shift."""
    mean = stats[:, 0] / count
    var = jnp.maximum(stats[:, 1] / count - mean * mean, 0.0)   # biased training-mode var
    scale = gamma * lax.rsqrt(var + EPS)
    shift = beta - mean * scale
    return scale.reshape(-1, 1), shift.reshape(-1, 1)


# --------------------------------------------------------------------- kernels ----
def _conv1_sc_kernel(x_ref, w_ref, h1_ref, hs_ref, st_ref, *, L, Cout):
    # x: (Cin, TL) bf16; w: (2*Cout, 3*Cin) bf16 = [w1 im2col ; wsc padded to middle tap].
    x = x_ref[...].astype(jnp.float32)                 # rolls in f32; bf16 values round-trip exactly
    cols = _im2col3(x, L).astype(jnp.bfloat16)         # (3*Cin, TL), cast at the MXU boundary
    h = jnp.dot(w_ref[...], cols, preferred_element_type=jnp.float32)   # (2*Cout, TL) f32
    h1_ref[...] = h[:Cout]                             # conv1 (k=3) output
    hs_ref[...] = h[Cout:]                             # fused k=1 shortcut conv output
    st_ref[...] = _partial_stats(h)                    # per-tile (sum, sumsq) for BN1 & BNsc


def _bn_relu_conv2_kernel(h1_ref, sc_ref, sh_ref, w_ref, h2_ref, st_ref, *, L):
    # BN1 (folded affine) + ReLU in f32, then conv2 as one fused im2col matmul.
    r = jnp.maximum(h1_ref[...] * sc_ref[...] + sh_ref[...], 0.0)       # (Cout, TL) f32
    cols = _im2col3(r, L).astype(jnp.bfloat16)                          # (3*Cout, TL)
    h2 = jnp.dot(w_ref[...], cols, preferred_element_type=jnp.float32)  # (Cout, TL) f32
    h2_ref[...] = h2
    st_ref[...] = _partial_stats(h2)                                    # partials for BN2


def _bn_add_relu_kernel(h2_ref, hs_ref, sc2_ref, sh2_ref, scs_ref, shs_ref, o_ref):
    # out = relu(BN2(conv2) + BNsc(shortcut)); pure VPU, lane-dense store.
    o_ref[...] = jnp.maximum(
        h2_ref[...] * sc2_ref[...] + sh2_ref[...]
        + hs_ref[...] * scs_ref[...] + shs_ref[...], 0.0)


# --------------------------------------------------------------------- wrapper ----
@functools.partial(jax.jit, static_argnames=("lane_tile_target",))
def residual_block(x_ncl, params, *, lane_tile_target=2048):
    """x_ncl: (N, Cin, L) float32 (PyTorch NCL layout).  Returns (N, Cout, L) float32.
    Implements stride=1 with the conv shortcut (inchannel != outchannel)."""
    # TODO(synk): stride > 1 (strided lane selection) and the identity-shortcut variant
    # (inchannel == outchannel, stride == 1) are not implemented.
    N, Cin, L = x_ncl.shape
    Cout = params["w1"].shape[0]
    NL = N * L
    TL = _pick_lane_tile(N, L, lane_tile_target)
    n_t = NL // TL

    # (N, Cin, L) -> (Cin, N*L): channels on sublanes, batch*length on lanes (lane-dense).
    # x is DMA'd as bf16 (halves the HBM read; the conv operands are bf16 anyway).
    x2d = jnp.transpose(x_ncl, (1, 0, 2)).reshape(Cin, NL).astype(jnp.bfloat16)

    # Conv weights as fused im2col matrices (k-major), bf16 MXU operands.
    w1m = jnp.transpose(params["w1"], (0, 2, 1)).reshape(Cout, 3 * Cin)
    wsc = params["wsc"][:, :, 0]
    wsc_pad = jnp.concatenate([jnp.zeros_like(wsc), wsc, jnp.zeros_like(wsc)], axis=1)
    w_cat = jnp.concatenate([w1m, wsc_pad], axis=0).astype(jnp.bfloat16)   # (2*Cout, 3*Cin)
    w2m = jnp.transpose(params["w2"], (0, 2, 1)).reshape(Cout, 3 * Cout).astype(jnp.bfloat16)

    cparams = pltpu.CompilerParams(
        dimension_semantics=("parallel",),     # per-tile partial stats => no cross-step carry
        vmem_limit_bytes=_vmem_limit_bytes())

    stream = lambda C: pl.BlockSpec((C, TL), lambda i: (0, i))       # streamed activation tiles
    resident = lambda shape: pl.BlockSpec(shape, lambda i: (0, 0))   # weights / BN affines
    stats_spec = lambda C: pl.BlockSpec((None, C, 2), lambda i: (i, 0, 0))

    # ---- pass 1: conv1 (k=3) + fused k=1 shortcut, per-tile BN partial stats ------------
    h1, hs, st1 = pl.pallas_call(
        functools.partial(_conv1_sc_kernel, L=L, Cout=Cout),
        grid=(n_t,),
        in_specs=[stream(Cin), resident((2 * Cout, 3 * Cin))],
        out_specs=[stream(Cout), stream(Cout), stats_spec(2 * Cout)],
        out_shape=[jax.ShapeDtypeStruct((Cout, NL), jnp.float32),
                   jax.ShapeDtypeStruct((Cout, NL), jnp.float32),
                   jax.ShapeDtypeStruct((n_t, 2 * Cout, 2), jnp.float32)],
        compiler_params=cparams,
    )(x2d, w_cat)

    st1 = jnp.sum(st1, axis=0)                                  # (2*Cout, 2) global stats
    sc1, sh1 = _fold_bn(st1[:Cout], params["g1"], params["b1"], NL)
    scs, shs = _fold_bn(st1[Cout:], params["gsc"], params["bsc"], NL)

    # ---- pass 2: BN1 + ReLU + conv2 (k=3), per-tile BN2 partial stats --------------------
    h2, st2 = pl.pallas_call(
        functools.partial(_bn_relu_conv2_kernel, L=L),
        grid=(n_t,),
        in_specs=[stream(Cout), resident((Cout, 1)), resident((Cout, 1)),
                  resident((Cout, 3 * Cout))],
        out_specs=[stream(Cout), stats_spec(Cout)],
        out_shape=[jax.ShapeDtypeStruct((Cout, NL), jnp.float32),
                   jax.ShapeDtypeStruct((n_t, Cout, 2), jnp.float32)],
        compiler_params=cparams,
    )(h1, sc1, sh1, w2m)

    sc2, sh2 = _fold_bn(jnp.sum(st2, axis=0), params["g2"], params["b2"], NL)

    # ---- pass 3: BN2 + BNsc + add + ReLU --------------------------------------------------
    out2d = pl.pallas_call(
        _bn_add_relu_kernel,
        grid=(n_t,),
        in_specs=[stream(Cout), stream(Cout),
                  resident((Cout, 1)), resident((Cout, 1)),
                  resident((Cout, 1)), resident((Cout, 1))],
        out_specs=stream(Cout),
        out_shape=jax.ShapeDtypeStruct((Cout, NL), jnp.float32),
        compiler_params=cparams,
    )(h2, hs, sc2, sh2, scs, shs)

    return out2d.reshape(Cout, N, L).transpose(1, 0, 2)          # back to (N, Cout, L)


# ------------------------------------------------------------------- reference ----
def reference(x, p):
    """Pure-JAX reference (NCL, lax.conv).  Conv operands are cast to bf16 with f32
    accumulation to mirror the kernel's mixed-precision matmuls (BN stays f32)."""
    bf = lambda a: a.astype(jnp.bfloat16)

    def conv(x, w, pad):
        return lax.conv_general_dilated(bf(x), bf(w), window_strides=(1,),
                                        padding=[(pad, pad)],
                                        dimension_numbers=('NCH', 'OIH', 'NCH'),
                                        preferred_element_type=jnp.float32)

    def bn(h, g, b):
        mean = jnp.mean(h, axis=(0, 2), keepdims=True)
        var = jnp.mean((h - mean) ** 2, axis=(0, 2), keepdims=True)
        return (h - mean) / jnp.sqrt(var + EPS) * g[None, :, None] + b[None, :, None]

    h = jax.nn.relu(bn(conv(x, p["w1"], 1), p["g1"], p["b1"]))
    h = bn(conv(h, p["w2"], 1), p["g2"], p["b2"])
    s = bn(conv(x, p["wsc"], 0), p["gsc"], p["bsc"])
    return jax.nn.relu(h + s)


def init_params(key, cin, cout):
    ks = jax.random.split(key, 9)
    return {
        "w1": 0.2 * jax.random.normal(ks[0], (cout, cin, 3), jnp.float32),
        "g1": 1.0 + 0.1 * jax.random.normal(ks[1], (cout,), jnp.float32),
        "b1": 0.1 * jax.random.normal(ks[2], (cout,), jnp.float32),
        "w2": 0.2 * jax.random.normal(ks[3], (cout, cout, 3), jnp.float32),
        "g2": 1.0 + 0.1 * jax.random.normal(ks[4], (cout,), jnp.float32),
        "b2": 0.1 * jax.random.normal(ks[5], (cout,), jnp.float32),
        "wsc": 0.2 * jax.random.normal(ks[6], (cout, cin, 1), jnp.float32),
        "gsc": 1.0 + 0.1 * jax.random.normal(ks[7], (cout,), jnp.float32),
        "bsc": 0.1 * jax.random.normal(ks[8], (cout,), jnp.float32),
    }


if __name__ == "__main__":
    key = jax.random.PRNGKey(0)
    k1, k2, k3, k4 = jax.random.split(key, 4)

    # Case 1: small shapes (N*L < 128) -> single resident lane tile, slice fallback path.
    x_a = jax.random.normal(k1, (2, 4, 16), jnp.float32)
    p_a = init_params(k2, 4, 8)
    out_a = jax.block_until_ready(residual_block(x_a, p_a))
    ref_a = jax.block_until_ready(reference(x_a, p_a))
    assert out_a.shape == (2, 8, 16)
    assert jnp.allclose(out_a, ref_a, atol=1e-2, rtol=1e-2), \
        f"case1 max abs err {float(jnp.max(jnp.abs(out_a - ref_a)))}"

    # Case 2: exercises the real grid (two 256-lane tiles), pltpu.roll taps and the
    # cross-tile two-pass BatchNorm statistics.
    x_b = jax.random.normal(k3, (4, 8, 128), jnp.float32)
    p_b = init_params(k4, 8, 16)
    out_b = jax.block_until_ready(residual_block(x_b, p_b, lane_tile_target=256))
    ref_b = jax.block_until_ready(reference(x_b, p_b))
    assert out_b.shape == (4, 16, 128)
    assert jnp.allclose(out_b, ref_b, atol=1e-2, rtol=1e-2), \
        f"case2 max abs err {float(jnp.max(jnp.abs(out_b - ref_b)))}"

    print("KERNEL_OK")
</pallas_src>

<mosaic_0001>
module attributes {stable_mosaic.version = 11 : i64} {
  func.func @_conv1_sc_kernel(%arg0: i32, %arg1: memref<4x32xbf16, #tpu.memory_space<vmem>>, %arg2: memref<16x12xbf16, #tpu.memory_space<vmem>>, %arg3: memref<8x32xf32, #tpu.memory_space<vmem>>, %arg4: memref<8x32xf32, #tpu.memory_space<vmem>>, %arg5: memref<1x16x2xf32, #tpu.memory_space<vmem>>) attributes {dimension_semantics = [#tpu.dimension_semantics<parallel>], iteration_bounds = array<i64: 1>, scalar_prefetch = 0 : i64, scratch_operands = 0 : i64, tpu.core_type = #tpu.core_type<tc>, window_params = [{transform_indices = @transform_0, window_bounds = array<i64: 4, 32>}, {pipeline_mode = #tpu.pipeline_mode<synchronous>, transform_indices = @transform_1, window_bounds = array<i64: 16, 12>}, {transform_indices = @transform_2, window_bounds = array<i64: 8, 32>}, {transform_indices = @transform_3, window_bounds = array<i64: 8, 32>}, {transform_indices = @transform_4, window_bounds = array<i64: 1, 16, 2>}]} {
    %c0 = arith.constant 0 : index
    %c0_0 = arith.constant 0 : index
    %0 = vector.load %arg1[%c0, %c0_0] : memref<4x32xbf16, #tpu.memory_space<vmem>>, vector<4x32xbf16>
    %1 = arith.extf %0 : vector<4x32xbf16> to vector<4x32xf32>
    %2 = tpu.iota {dimensions = array<i32: 1>} : vector<4x32xi32>
    %c16_i32 = arith.constant 16 : i32
    %c0_i32 = arith.constant 0 : i32
    %3 = arith.cmpi eq, %c16_i32, %c0_i32 : i32
    %c1_i32 = arith.constant 1 : i32
    %4 = arith.select %3, %c1_i32, %c16_i32 : i32
    %5 = vector.broadcast %4 : i32 to vector<4x32xi32>
    %6 = arith.remsi %2, %5 : vector<4x32xi32>
    %c0_i32_1 = arith.constant 0 : i32
    %7 = vector.broadcast %c0_i32_1 : i32 to vector<4x32xi32>
    %8 = arith.cmpi ne, %6, %7 : vector<4x32xi32>
    %c0_i32_2 = arith.constant 0 : i32
    %9 = vector.broadcast %c0_i32_2 : i32 to vector<4x32xi32>
    %10 = arith.cmpi slt, %6, %9 : vector<4x32xi32>
    %c0_i32_3 = arith.constant 0 : i32
    %11 = arith.cmpi slt, %4, %c0_i32_3 : i32
    %12 = vector.broadcast %11 : i1 to vector<4x32xi1>
    %13 = vector.broadcast %12 : vector<4x32xi1> to vector<4x32xi1>
    %14 = arith.xori %10, %13 : vector<4x32xi1>
    %15 = arith.andi %14, %8 : vector<4x32xi1>
    %16 = vector.broadcast %4 : i32 to vector<4x32xi32>
    %17 = arith.addi %6, %16 : vector<4x32xi32>
    %18 = arith.select %15, %17, %6 : vector<4x32xi1>, vector<4x32xi32>
    %cst = arith.constant 0.000000e+00 : f32
    %19 = vector.broadcast %cst : f32 to vector<4x32xf32>
    %cst_4 = arith.constant 0.000000e+00 : f32
    %20 = vector.broadcast %cst_4 : f32 to vector<4x1xf32>
    %21 = vector.extract_strided_slice %1 {offsets = [0, 0], sizes = [4, 31], strides = [1, 1]} : vector<4x32xf32> to vector<4x31xf32>
    %22 = tpu.concatenate %20, %21 in 1 : vector<4x1xf32>, vector<4x31xf32> -> vector<4x32xf32>
    %23 = vector.extract_strided_slice %1 {offsets = [0, 1], sizes = [4, 31], strides = [1, 1]} : vector<4x32xf32> to vector<4x31xf32>
    %24 = tpu.concatenate %23, %20 in 1 : vector<4x31xf32>, vector<4x1xf32> -> vector<4x32xf32>
    %c0_i32_5 = arith.constant 0 : i32
    %25 = vector.broadcast %c0_i32_5 : i32 to vector<4x32xi32>
    %26 = arith.cmpi eq, %18, %25 : vector<4x32xi32>
    %27 = arith.select %26, %19, %22 : vector<4x32xi1>, vector<4x32xf32>
    %c15_i32 = arith.constant 15 : i32
    %28 = vector.broadcast %c15_i32 : i32 to vector<4x32xi32>
    %29 = arith.cmpi eq, %18, %28 : vector<4x32xi32>
    %30 = arith.select %29, %19, %24 : vector<4x32xi1>, vector<4x32xf32>
    %31 = tpu.concatenate %27, %1, %30 in 0 : vector<4x32xf32>, vector<4x32xf32>, vector<4x32xf32> -> vector<12x32xf32>
    %32 = arith.truncf %31 : vector<12x32xf32> to vector<12x32xbf16>
    %c0_6 = arith.constant 0 : index
    %c0_7 = arith.constant 0 : index
    %33 = vector.load %arg2[%c0_6, %c0_7] : memref<16x12xbf16, #tpu.memory_space<vmem>>, vector<16x12xbf16>
    %cst_8 = arith.constant dense<0.000000e+00> : vector<16x32xf32>
    %34 = tpu.matmul %33, %32, %cst_8 {dimension_numbers = #tpu.dot_dimension_numbers<[1], [0], [0], [1], [0, 0, 1, 1], [], []>} : vector<16x12xbf16>, vector<12x32xbf16>, vector<16x32xf32> -> vector<16x32xf32>
    %35 = vector.extract_strided_slice %34 {offsets = [0, 0], sizes = [8, 32], strides = [1, 1]} : vector<16x32xf32> to vector<8x32xf32>
    %c0_9 = arith.constant 0 : index
    %c0_10 = arith.constant 0 : index
    %36 = vector.load %arg3[%c0_9, %c0_10] : memref<8x32xf32, #tpu.memory_space<vmem>>, vector<8x32xf32>
    tpu.vector_store %arg3[%c0_9, %c0_10], %35 {strides = array<i32>} : memref<8x32xf32, #tpu.memory_space<vmem>>, vector<8x32xf32>,
    %37 = vector.extract_strided_slice %34 {offsets = [8, 0], sizes = [8, 32], strides = [1, 1]} : vector<16x32xf32> to vector<8x32xf32>
    %c0_11 = arith.constant 0 : index
    %c0_12 = arith.constant 0 : index
    %38 = vector.load %arg4[%c0_11, %c0_12] : memref<8x32xf32, #tpu.memory_space<vmem>>, vector<8x32xf32>
    tpu.vector_store %arg4[%c0_11, %c0_12], %37 {strides = array<i32>} : memref<8x32xf32, #tpu.memory_space<vmem>>, vector<8x32xf32>,
    %cst_13 = arith.constant dense<0.000000e+00> : vector<16xf32>
    %39 = vector.multi_reduction <add>, %34, %cst_13 [1] : vector<16x32xf32> to vector<16xf32>
    %40 = vector.shape_cast %39 : vector<16xf32> to vector<16x1xf32>
    %41 = arith.mulf %34, %34 : vector<16x32xf32>
    %cst_14 = arith.constant dense<0.000000e+00> : vector<16xf32>
    %42 = vector.multi_reduction <add>, %41, %cst_14 [1] : vector<16x32xf32> to vector<16xf32>
    %43 = vector.shape_cast %42 : vector<16xf32> to vector<16x1xf32>
    %44 = tpu.concatenate %40, %43 in 1 : vector<16x1xf32>, vector<16x1xf32> -> vector<16x2xf32>
    %c0_15 = arith.constant 0 : index
    %c0_16 = arith.constant 0 : index
    %c0_17 = arith.constant 0 : index
    %45 = vector.load %arg5[%c0_15, %c0_16, %c0_17] : memref<1x16x2xf32, #tpu.memory_space<vmem>>, vector<1x16x2xf32>
    %46 = vector.shape_cast %45 : vector<1x16x2xf32> to vector<16x2xf32>
    %47 = vector.shape_cast %44 : vector<16x2xf32> to vector<1x16x2xf32>
    tpu.vector_store %arg5[%c0_15, %c0_16, %c0_17], %47 {strides = array<i32>} : memref<1x16x2xf32, #tpu.memory_space<vmem>>, vector<1x16x2xf32>,
    return
  }
  func.func @transform_0(%arg0: i32) -> (i32, i32) {
    %c0_i32 = arith.constant 0 : i32
    %c0_i32_0 = arith.constant 0 : i32
    return %c0_i32, %arg0 : i32, i32
  }
  func.func @transform_1(%arg0: i32) -> (i32, i32) {
    %c0_i32 = arith.constant 0 : i32
    %c0_i32_0 = arith.constant 0 : i32
    %c0_i32_1 = arith.constant 0 : i32
    return %c0_i32, %c0_i32_0 : i32, i32
  }
  func.func @transform_2(%arg0: i32) -> (i32, i32) {
    %c0_i32 = arith.constant 0 : i32
    %c0_i32_0 = arith.constant 0 : i32
    return %c0_i32, %arg0 : i32, i32
  }
  func.func @transform_3(%arg0: i32) -> (i32, i32) {
    %c0_i32 = arith.constant 0 : i32
    %c0_i32_0 = arith.constant 0 : i32
    return %c0_i32, %arg0 : i32, i32
  }
  func.func @transform_4(%arg0: i32) -> (i32, i32, i32) {
    %c0_i32 = arith.constant 0 : i32
    %c0_i32_0 = arith.constant 0 : i32
    %c0_i32_1 = arith.constant 0 : i32
    return %arg0, %c0_i32, %c0_i32_0 : i32, i32, i32
  }
}

module attributes {stable_mosaic.version = 11 : i64} {
  func.func @_bn_add_relu_kernel(%arg0: i32, %arg1: memref<8x32xf32, #tpu.memory_space<vmem>>, %arg2: memref<8x32xf32, #tpu.memory_space<vmem>>, %arg3: memref<8x1xf32, #tpu.memory_space<vmem>>, %arg4: memref<8x1xf32, #tpu.memory_space<vmem>>, %arg5: memref<8x1xf32, #tpu.memory_space<vmem>>, %arg6: memref<8x1xf32, #tpu.memory_space<vmem>>, %arg7: memref<8x32xf32, #tpu.memory_space<vmem>>) attributes {dimension_semantics = [#tpu.dimension_semantics<parallel>], iteration_bounds = array<i64: 1>, scalar_prefetch = 0 : i64, scratch_operands = 0 : i64, tpu.core_type = #tpu.core_type<tc>, window_params = [{transform_indices = @transform_0, window_bounds = array<i64: 8, 32>}, {transform_indices = @transform_1, window_bounds = array<i64: 8, 32>}, {pipeline_mode = #tpu.pipeline_mode<synchronous>, transform_indices = @transform_2, window_bounds = array<i64: 8, 1>}, {pipeline_mode = #tpu.pipeline_mode<synchronous>, transform_indices = @transform_3, window_bounds = array<i64: 8, 1>}, {pipeline_mode = #tpu.pipeline_mode<synchronous>, transform_indices = @transform_4, window_bounds = array<i64: 8, 1>}, {pipeline_mode = #tpu.pipeline_mode<synchronous>, transform_indices = @transform_5, window_bounds = array<i64: 8, 1>}, {transform_indices = @transform_6, window_bounds = array<i64: 8, 32>}]} {
    %c0 = arith.constant 0 : index
    %c0_0 = arith.constant 0 : index
    %0 = vector.load %arg1[%c0, %c0_0] : memref<8x32xf32, #tpu.memory_space<vmem>>, vector<8x32xf32>
    %c0_1 = arith.constant 0 : index
    %c0_2 = arith.constant 0 : index
    %1 = vector.load %arg3[%c0_1, %c0_2] : memref<8x1xf32, #tpu.memory_space<vmem>>, vector<8x1xf32>
    %2 = vector.broadcast %1 : vector<8x1xf32> to vector<8x32xf32>
    %3 = arith.mulf %0, %2 : vector<8x32xf32>
    %c0_3 = arith.constant 0 : index
    %c0_4 = arith.constant 0 : index
    %4 = vector.load %arg4[%c0_3, %c0_4] : memref<8x1xf32, #tpu.memory_space<vmem>>, vector<8x1xf32>
    %5 = vector.broadcast %4 : vector<8x1xf32> to vector<8x32xf32>
    %6 = arith.addf %3, %5 : vector<8x32xf32>
    %c0_5 = arith.constant 0 : index
    %c0_6 = arith.constant 0 : index
    %7 = vector.load %arg2[%c0_5, %c0_6] : memref<8x32xf32, #tpu.memory_space<vmem>>, vector<8x32xf32>
    %c0_7 = arith.constant 0 : index
    %c0_8 = arith.constant 0 : index
    %8 = vector.load %arg5[%c0_7, %c0_8] : memref<8x1xf32, #tpu.memory_space<vmem>>, vector<8x1xf32>
    %9 = vector.broadcast %8 : vector<8x1xf32> to vector<8x32xf32>
    %10 = arith.mulf %7, %9 : vector<8x32xf32>
    %11 = arith.addf %6, %10 : vector<8x32xf32>
    %c0_9 = arith.constant 0 : index
    %c0_10 = arith.constant 0 : index
    %12 = vector.load %arg6[%c0_9, %c0_10] : memref<8x1xf32, #tpu.memory_space<vmem>>, vector<8x1xf32>
    %13 = vector.broadcast %12 : vector<8x1xf32> to vector<8x32xf32>
    %14 = arith.addf %11, %13 : vector<8x32xf32>
    %cst = arith.constant 0.000000e+00 : f32
    %15 = vector.broadcast %cst : f32 to vector<8x32xf32>
    %16 = arith.maximumf %14, %15 : vector<8x32xf32>
    %c0_11 = arith.constant 0 : index
    %c0_12 = arith.constant 0 : index
    %17 = vector.load %arg7[%c0_11, %c0_12] : memref<8x32xf32, #tpu.memory_space<vmem>>, vector<8x32xf32>
    tpu.vector_store %arg7[%c0_11, %c0_12], %16 {strides = array<i32>} : memref<8x32xf32, #tpu.memory_space<vmem>>, vector<8x32xf32>,
    return
  }
  func.func @transform_0(%arg0: i32) -> (i32, i32) {
    %c0_i32 = arith.constant 0 : i32
    %c0_i32_0 = arith.constant 0 : i32
    return %c0_i32, %arg0 : i32, i32
  }
  func.func @transform_1(%arg0: i32) -> (i32, i32) {
    %c0_i32 = arith.constant 0 : i32
    %c0_i32_0 = arith.constant 0 : i32
    return %c0_i32, %arg0 : i32, i32
  }
  func.func @transform_2(%arg0: i32) -> (i32, i32) {
    %c0_i32 = arith.constant 0 : i32
    %c0_i32_0 = arith.constant 0 : i32
    %c0_i32_1 = arith.constant 0 : i32
    return %c0_i32, %c0_i32_0 : i32, i32
  }
  func.func @transform_3(%arg0: i32) -> (i32, i32) {
    %c0_i32 = arith.constant 0 : i32
    %c0_i32_0 = arith.constant 0 : i32
    %c0_i32_1 = arith.constant 0 : i32
    return %c0_i32, %c0_i32_0 : i32, i32
  }
  func.func @transform_4(%arg0: i32) -> (i32, i32) {
    %c0_i32 = arith.constant 0 : i32
    %c0_i32_0 = arith.constant 0 : i32
    %c0_i32_1 = arith.constant 0 : i32
    return %c0_i32, %c0_i32_0 : i32, i32
  }
  func.func @transform_5(%arg0: i32) -> (i32, i32) {
    %c0_i32 = arith.constant 0 : i32
    %c0_i32_0 = arith.constant 0 : i32
    %c0_i32_1 = arith.constant 0 : i32
    return %c0_i32, %c0_i32_0 : i32, i32
  }
  func.func @transform_6(%arg0: i32) -> (i32, i32) {
    %c0_i32 = arith.constant 0 : i32
    %c0_i32_0 = arith.constant 0 : i32
    return %c0_i32, %arg0 : i32, i32
  }
}

module attributes {stable_mosaic.version = 11 : i64} {
  func.func @_bn_relu_conv2_kernel(%arg0: i32, %arg1: memref<8x32xf32, #tpu.memory_space<vmem>>, %arg2: memref<8x1xf32, #tpu.memory_space<vmem>>, %arg3: memref<8x1xf32, #tpu.memory_space<vmem>>, %arg4: memref<8x24xbf16, #tpu.memory_space<vmem>>, %arg5: memref<8x32xf32, #tpu.memory_space<vmem>>, %arg6: memref<1x8x2xf32, #tpu.memory_space<vmem>>) attributes {dimension_semantics = [#tpu.dimension_semantics<parallel>], iteration_bounds = array<i64: 1>, scalar_prefetch = 0 : i64, scratch_operands = 0 : i64, tpu.core_type = #tpu.core_type<tc>, window_params = [{transform_indices = @transform_0, window_bounds = array<i64: 8, 32>}, {pipeline_mode = #tpu.pipeline_mode<synchronous>, transform_indices = @transform_1, window_bounds = array<i64: 8, 1>}, {pipeline_mode = #tpu.pipeline_mode<synchronous>, transform_indices = @transform_2, window_bounds = array<i64: 8, 1>}, {pipeline_mode = #tpu.pipeline_mode<synchronous>, transform_indices = @transform_3, window_bounds = array<i64: 8, 24>}, {transform_indices = @transform_4, window_bounds = array<i64: 8, 32>}, {transform_indices = @transform_5, window_bounds = array<i64: 1, 8, 2>}]} {
    %c0 = arith.constant 0 : index
    %c0_0 = arith.constant 0 : index
    %0 = vector.load %arg1[%c0, %c0_0] : memref<8x32xf32, #tpu.memory_space<vmem>>, vector<8x32xf32>
    %c0_1 = arith.constant 0 : index
    %c0_2 = arith.constant 0 : index
    %1 = vector.load %arg2[%c0_1, %c0_2] : memref<8x1xf32, #tpu.memory_space<vmem>>, vector<8x1xf32>
    %2 = vector.broadcast %1 : vector<8x1xf32> to vector<8x32xf32>
    %3 = arith.mulf %0, %2 : vector<8x32xf32>
    %c0_3 = arith.constant 0 : index
    %c0_4 = arith.constant 0 : index
    %4 = vector.load %arg3[%c0_3, %c0_4] : memref<8x1xf32, #tpu.memory_space<vmem>>, vector<8x1xf32>
    %5 = vector.broadcast %4 : vector<8x1xf32> to vector<8x32xf32>
    %6 = arith.addf %3, %5 : vector<8x32xf32>
    %cst = arith.constant 0.000000e+00 : f32
    %7 = vector.broadcast %cst : f32 to vector<8x32xf32>
    %8 = arith.maximumf %6, %7 : vector<8x32xf32>
    %9 = tpu.iota {dimensions = array<i32: 1>} : vector<8x32xi32>
    %c16_i32 = arith.constant 16 : i32
    %c0_i32 = arith.constant 0 : i32
    %10 = arith.cmpi eq, %c16_i32, %c0_i32 : i32
    %c1_i32 = arith.constant 1 : i32
    %11 = arith.select %10, %c1_i32, %c16_i32 : i32
    %12 = vector.broadcast %11 : i32 to vector<8x32xi32>
    %13 = arith.remsi %9, %12 : vector<8x32xi32>
    %c0_i32_5 = arith.constant 0 : i32
    %14 = vector.broadcast %c0_i32_5 : i32 to vector<8x32xi32>
    %15 = arith.cmpi ne, %13, %14 : vector<8x32xi32>
    %c0_i32_6 = arith.constant 0 : i32
    %16 = vector.broadcast %c0_i32_6 : i32 to vector<8x32xi32>
    %17 = arith.cmpi slt, %13, %16 : vector<8x32xi32>
    %c0_i32_7 = arith.constant 0 : i32
    %18 = arith.cmpi slt, %11, %c0_i32_7 : i32
    %19 = vector.broadcast %18 : i1 to vector<8x32xi1>
    %20 = vector.broadcast %19 : vector<8x32xi1> to vector<8x32xi1>
    %21 = arith.xori %17, %20 : vector<8x32xi1>
    %22 = arith.andi %21, %15 : vector<8x32xi1>
    %23 = vector.broadcast %11 : i32 to vector<8x32xi32>
    %24 = arith.addi %13, %23 : vector<8x32xi32>
    %25 = arith.select %22, %24, %13 : vector<8x32xi1>, vector<8x32xi32>
    %cst_8 = arith.constant 0.000000e+00 : f32
    %26 = vector.broadcast %cst_8 : f32 to vector<8x32xf32>
    %cst_9 = arith.constant 0.000000e+00 : f32
    %27 = vector.broadcast %cst_9 : f32 to vector<8x1xf32>
    %28 = vector.extract_strided_slice %8 {offsets = [0, 0], sizes = [8, 31], strides = [1, 1]} : vector<8x32xf32> to vector<8x31xf32>
    %29 = tpu.concatenate %27, %28 in 1 : vector<8x1xf32>, vector<8x31xf32> -> vector<8x32xf32>
    %30 = vector.extract_strided_slice %8 {offsets = [0, 1], sizes = [8, 31], strides = [1, 1]} : vector<8x32xf32> to vector<8x31xf32>
    %31 = tpu.concatenate %30, %27 in 1 : vector<8x31xf32>, vector<8x1xf32> -> vector<8x32xf32>
    %c0_i32_10 = arith.constant 0 : i32
    %32 = vector.broadcast %c0_i32_10 : i32 to vector<8x32xi32>
    %33 = arith.cmpi eq, %25, %32 : vector<8x32xi32>
    %34 = arith.select %33, %26, %29 : vector<8x32xi1>, vector<8x32xf32>
    %c15_i32 = arith.constant 15 : i32
    %35 = vector.broadcast %c15_i32 : i32 to vector<8x32xi32>
    %36 = arith.cmpi eq, %25, %35 : vector<8x32xi32>
    %37 = arith.select %36, %26, %31 : vector<8x32xi1>, vector<8x32xf32>
    %38 = tpu.concatenate %34, %8, %37 in 0 : vector<8x32xf32>, vector<8x32xf32>, vector<8x32xf32> -> vector<24x32xf32>
    %39 = arith.truncf %38 : vector<24x32xf32> to vector<24x32xbf16>
    %c0_11 = arith.constant 0 : index
    %c0_12 = arith.constant 0 : index
    %40 = vector.load %arg4[%c0_11, %c0_12] : memref<8x24xbf16, #tpu.memory_space<vmem>>, vector<8x24xbf16>
    %cst_13 = arith.constant dense<0.000000e+00> : vector<8x32xf32>
    %41 = tpu.matmul %40, %39, %cst_13 {dimension_numbers = #tpu.dot_dimension_numbers<[1], [0], [0], [1], [0, 0, 1, 1], [], []>} : vector<8x24xbf16>, vector<24x32xbf16>, vector<8x32xf32> -> vector<8x32xf32>
    %c0_14 = arith.constant 0 : index
    %c0_15 = arith.constant 0 : index
    %42 = vector.load %arg5[%c0_14, %c0_15] : memref<8x32xf32, #tpu.memory_space<vmem>>, vector<8x32xf32>
    tpu.vector_store %arg5[%c0_14, %c0_15], %41 {strides = array<i32>} : memref<8x32xf32, #tpu.memory_space<vmem>>, vector<8x32xf32>,
    %cst_16 = arith.constant dense<0.000000e+00> : vector<8xf32>
    %43 = vector.multi_reduction <add>, %41, %cst_16 [1] : vector<8x32xf32> to vector<8xf32>
    %44 = vector.shape_cast %43 : vector<8xf32> to vector<8x1xf32>
    %45 = arith.mulf %41, %41 : vector<8x32xf32>
    %cst_17 = arith.constant dense<0.000000e+00> : vector<8xf32>
    %46 = vector.multi_reduction <add>, %45, %cst_17 [1] : vector<8x32xf32> to vector<8xf32>
    %47 = vector.shape_cast %46 : vector<8xf32> to vector<8x1xf32>
    %48 = tpu.concatenate %44, %47 in 1 : vector<8x1xf32>, vector<8x1xf32> -> vector<8x2xf32>
    %c0_18 = arith.constant 0 : index
    %c0_19 = arith.constant 0 : index
    %c0_20 = arith.constant 0 : index
    %49 = vector.load %arg6[%c0_18, %c0_19, %c0_20] : memref<1x8x2xf32, #tpu.memory_space<vmem>>, vector<1x8x2xf32>
    %50 = vector.shape_cast %49 : vector<1x8x2xf32> to vector<8x2xf32>
    %51 = vector.shape_cast %48 : vector<8x2xf32> to vector<1x8x2xf32>
    tpu.vector_store %arg6[%c0_18, %c0_19, %c0_20], %51 {strides = array<i32>} : memref<1x8x2xf32, #tpu.memory_space<vmem>>, vector<1x8x2xf32>,
    return
  }
  func.func @transform_0(%arg0: i32) -> (i32, i32) {
    %c0_i32 = arith.constant 0 : i32
    %c0_i32_0 = arith.constant 0 : i32
    return %c0_i32, %arg0 : i32, i32
  }
  func.func @transform_1(%arg0: i32) -> (i32, i32) {
    %c0_i32 = arith.constant 0 : i32
    %c0_i32_0 = arith.constant 0 : i32
    %c0_i32_1 = arith.constant 0 : i32
    return %c0_i32, %c0_i32_0 : i32, i32
  }
  func.func @transform_2(%arg0: i32) -> (i32, i32) {
    %c0_i32 = arith.constant 0 : i32
    %c0_i32_0 = arith.constant 0 : i32
    %c0_i32_1 = arith.constant 0 : i32
    return %c0_i32, %c0_i32_0 : i32, i32
  }
  func.func @transform_3(%arg0: i32) -> (i32, i32) {
    %c0_i32 = arith.constant 0 : i32
    %c0_i32_0 = arith.constant 0 : i32
    %c0_i32_1 = arith.constant 0 : i32
    return %c0_i32, %c0_i32_0 : i32, i32
  }
  func.func @transform_4(%arg0: i32) -> (i32, i32) {
    %c0_i32 = arith.constant 0 : i32
    %c0_i32_0 = arith.constant 0 : i32
    return %c0_i32, %arg0 : i32, i32
  }
  func.func @transform_5(%arg0: i32) -> (i32, i32, i32) {
    %c0_i32 = arith.constant 0 : i32
    %c0_i32_0 = arith.constant 0 : i32
    %c0_i32_1 = arith.constant 0 : i32
    return %arg0, %c0_i32, %c0_i32_0 : i32, i32, i32
  }
}

</mosaic_0001>

<bundles_post_ra>
// kernel: residual_block.5
= control target key start
LH: loop header
LB: loop body
LE: loop exit
PB: predicated region body
PF: predicated region fallthrough
CT: control target
= control target key end

     0   :  { %v64_v0 = vmov 0   ;;  %vm55_vm0 = vcmask 261120   ;;  %s121_s4 = inlined_call_operand.vmem [shape: f32[8,1], index: 4, kind: input, shape index: {}]   ;;  %s122_s2 = inlined_call_operand.vmem [shape: f32[8,1], index: 2, kind: input, shape index: {}]   ;;  %s123_s5 = inlined_call_operand.vmem [shape: f32[8,1], index: 5, kind: input, shape index: {}]   ;;  %s124_s3 = inlined_call_operand.vmem [shape: f32[8,1], index: 3, kind: input, shape index: {}]   ;;  %s125_s1 = inlined_call_operand.vmem [shape: f32[8,32], index: 1, kind: input, shape index: {}]   ;;  %s126_s0 = inlined_call_operand.vmem [shape: f32[8,32], index: 0, kind: input, shape index: {}]   ;;  %s127_s6 = inlined_call_operand.vmem [shape: f32[8,32], index: 6, kind: output, shape index: {}]  }
   0x1   :  { %63 = vset.pattern.permute.xlu1 %v64_v0  ;;  %62 = vset.pattern.permute.xlu0 %v64_v0  ;;  %v39_v1 = vld [vmem:[%s121_s4] sm:$0xff] }
   0x2   :  { %v24_v2 = vld [vmem:[%s122_s2] sm:$0xff]  ;;  %42 = vperm.xlu1 %63, %v39_v1  }
   0x3   :  { %27 = vperm.xlu0 %62, %v24_v2   ;;  %v47_v3 = vld [vmem:[%s123_s5] sm:$0xff] }
   0x4   :  { %v31_v4 = vld [vmem:[%s124_s3] sm:$0xff] }
   0x5   :  { %v38_v5 = vld [vmem:[%s125_s1] sm:$0xff] }
   0x6   :  { %50 = vperm.xlu1 %63, %v47_v3   ;;  %v23_v7 = vld [vmem:[%s126_s0] sm:$0xff] }
   0x7   :  { %34 = vperm.xlu0 %62, %v31_v4  }
  0x81   :  { %v43_v8 = vpop.permute.xlu1 %42 }
  0x82   :  { %v28_v6 = vpop.permute.xlu0 %27  ;;  %v45_v9 = vmul.f32 %v43_v8, %v38_v5 }
  0x83   :  { %v30_v10 = vmul.f32 %v28_v6, %v23_v7 }
  0x85   :  { %v51_v14 = vpop.permute.xlu1 %50 }
  0x86   :  { %v35_v11 = vpop.permute.xlu0 %34 }
  0x87   :  { %v37_v12 = vadd.f32 %v35_v11, %v30_v10 }
  0x89   :  { %v46_v13 = vadd.f32 %v45_v9, %v37_v12 }
  0x8b   :  { %v53_v15 = vadd.f32 %v51_v14, %v46_v13 }
  0x8d   :  { %v54_v16 = vmax.f32 %v53_v15, 0.0 }
  0x8f   :  { %56 = vst.msk [vmem:[%s127_s6] sm:$0xff] %vm55_vm0, %v54_v16 }

// kernel: residual_block.4
= control target key start
LH: loop header
LB: loop body
LE: loop exit
PB: predicated region body
PF: predicated region fallthrough
CT: control target
= control target key end

     0   :  { %v160_v0 = vmov 0   ;;  %v161_v3 = vmov 0.0   ;;  %vm162_vm0 = vmmov 0   ;;  %s164_s24 = smov 127   ;;  %v36_v10 = vlaneseq  ;;  %s216_s1 = inlined_call_operand.vmem [shape: f32[8,1], index: 1, kind: input, shape index: {}]   ;;  %s217_s2 = inlined_call_operand.vmem [shape: f32[8,1], index: 2, kind: input, shape index: {}]   ;;  %s218_s0 = inlined_call_operand.vmem [shape: f32[8,32], index: 0, kind: input, shape index: {}]   ;;  %s219_s3 = inlined_call_operand.vmem [shape: bf16[8,24], index: 3, kind: input, shape index: {}]   ;;  %s220_s4 = inlined_call_operand.vmem [shape: f32[8,32], index: 4, kind: output, shape index: {0}]   ;;  %s221_s5 = inlined_call_operand.vmem [shape: f32[1,8,2], index: 5, kind: output, shape index: {1}]  }
   0x1   :  { %159 = vset.pattern.permute.xlu0 %v160_v0  ;;  %v21_v1 = vld [vmem:[%s216_s1] sm:$0xff]  ;;  %145 = vmatprep.subr.bf16.mxu0 %v161_v3  ;;  %s163_s1 = smov 1   ;;  %vm54_vm1 = vcmask 7168   ;;  %vm165_vm3 = vmmov 1   ;;  %vm59_vm5 = vcmask 252928   ;;  %vm72_vm7 = vcmask 1043456  }
   0x2   :  { %24 = vperm.xlu0 %159, %v21_v1   ;;  %v28_v2 = vld [vmem:[%s217_s2] sm:$0xff]  ;;  %149 = vmatprep.mubr.msk.bf16.mxu0 %vm162_vm0, %v161_v3  ;;  %v37_v11 = vand.u32 127, %v36_v10  ;;  %vm68_vm8 = vcmask 195584   ;;  %vm116_vm9 = vcmask 261120   ;;  %vm126_vm10 = vcmask 15360  }
   0x3   :  { %v20_v5 = vld [vmem:[%s218_s0] sm:$0xff] }
   0x4   :  { %v42_v12 = vand.u32 15, %v37_v11  ;;  %v67_v21 = vld [vmem:[%s219_s3] sm:$0xf] }
   0x6   :  { %31 = vperm.xlu0 %159, %v28_v2   ;;  %vm141_vm2 = vcmp.ne.s32.totalorder %v42_v12, 0  ;;  %vm63_vm6 = vcmp.eq.s32.totalorder %v42_v12, 15 }
   0x7   :  { %vm137_vm4 = vmpackc.low %vm165_vm3, %vm141_vm2 }
  0x81   :  { %v25_v4 = vpop.permute.xlu0 %24 }
  0x82   :  { %v27_v6 = vmul.f32 %v25_v4, %v20_v5 }
  0x85   :  { %v32_v7 = vpop.permute.xlu0 %31 }
  0x86   :  { %v34_v8 = vadd.f32 %v32_v7, %v27_v6 }
  0x88   :  { %v35_v9 = vmax.f32 %v34_v8, 0.0 }
  0x8a   :  { %51 = vrot.lane.b32.xlu1 %v35_v9, %s163_s1 }
  0x8e   :  { %56 = vrot.lane.b32.xlu1 %v35_v9, %s164_s24 }
  0xfc   :  { %v52_v13 = vpop.permute.xlu1 %51 }
  0xfd   :  { %v55_v14 = vsel %vm54_vm1, 0.0, %v52_v13 }
  0xfe   :  { %v138_v15 = vpack.c.bf16 %v35_v9, %v55_v14 }
 0x100   :  { %146 = vmatpush3.bf16.msk.msra.mxu0 %vm137_vm4, %v138_v15  ;;  %v57_v16 = vpop.permute.xlu1 %56 }
 0x101   :  { %v60_v17 = vsel %vm59_vm5, %v57_v16, 0.0  ;;  %147 = vmatprep.subr.bf16.mxu0 %v161_v3 }
 0x102   :  { %v64_v18 = vsel %vm63_vm6, 0.0, %v60_v17 }
 0x103   :  { %v66_v19 = vpack.c.bf16 %v64_v18, %v64_v18 }
 0x105   :  { %v74_v20 = vsel %vm72_vm7, %v66_v19, 0 }
 0x106   :  { %148 = vmatpush3.bf16.msra.mxu0 %v74_v20 }
 0x109   :  { %150 = vmatmul.mubr.msk.bf16.vlgmr.msra.gmra.mrb[0].mxu0 %vm68_vm8, %v67_v21 }
 0x1dc   :  { %v110_v22 = vpop.f32.mrb[0].mxu0 }
 0x1dd   :  { %v151_v23 = vpop.f32.mrb[1].mxu0  ;;  %v118_v24 = vsel %vm116_vm9, %v110_v22, 0.0  ;;  %117 = vst.msk [vmem:[%s220_s4] sm:$0xff] %vm116_vm9, %v110_v22  ;;  %v121_v25 = vmul.f32 %v110_v22, %v110_v22 }
 0x1de   :  { %119 = vadd.xlane.f32.xlu0 %v118_v24  ;;  %v113_v26 = vpop.f32.mrb[2].mxu0 }
 0x1df   :  { %v152_v27 = vpop.f32.mrb[3].mxu0  ;;  %v122_v28 = vsel %vm116_vm9, %v121_v25, 0.0 }
 0x1e0   :  { %123 = vadd.xlane.f32.xlu1 %v122_v28 }
 0x26b   :  { %v120_v29 = vpop.xlane.xlu0 %119 }
 0x26d   :  { %v124_v30 = vpop.xlane.xlu1 %123 }
 0x26e   :  { %v125_v31 = vsel %vm54_vm1, %v120_v29, %v124_v30 }
 0x26f   :  { %127 = vst.msk [vmem:[%s221_s5] sm:$0xff] %vm126_vm10, %v125_v31 }

// kernel: residual_block.3
= control target key start
LH: loop header
LB: loop body
LE: loop exit
PB: predicated region body
PF: predicated region fallthrough
CT: control target
= control target key end

     0   :  { %v156_v1 = vmov 0.0   ;;  %vm157_vm0 = vmmov 0   ;;  %s158_s17 = smov 1   ;;  %s159_s18 = smov 127   ;;  %v17_v3 = vlaneseq  ;;  %vm35_vm1 = vcmask 7168   ;;  %s212_s0 = inlined_call_operand.vmem [shape: bf16[4,32], index: 0, kind: input, shape index: {}]   ;;  %s213_s1 = inlined_call_operand.vmem [shape: bf16[16,12], index: 1, kind: input, shape index: {}]   ;;  %s214_s2 = inlined_call_operand.vmem [shape: f32[8,32], index: 2, kind: output, shape index: {0}]   ;;  %s215_s3 = inlined_call_operand.vmem [shape: f32[8,32], index: 3, kind: output, shape index: {1}]   ;;  %s216_s4 = inlined_call_operand.vmem [shape: f32[1,16,2], index: 4, kind: output, shape index: {2}]  }
   0x1   :  { %v15_v0 = vld [vmem:[%s212_s0] sm:$0x3]  ;;  %145 = vmatprep.subr.bf16.mxu0 %v156_v1  ;;  %147 = vmatprep.mubr.msk.bf16.mxu0 %vm157_vm0, %v156_v1  ;;  %vm40_vm3 = vcmask 252928   ;;  %vm48_vm5 = vcmask 1043456   ;;  %vm62_vm6 = vcmask 1045504   ;;  %vm58_vm7 = vcmask 97280  }
   0x2   :  { %v16_v2 = vunpack.c.l.bf16 %v15_v0  ;;  %v18_v4 = vand.u32 127, %v17_v3  ;;  %v155_v16 = vld [vmem:[%s213_s1] sm:$0xff]   ;;  %vm107_vm8 = vcmask 261120   ;;  %vm126_vm9 = vcmask 15360  }
   0x4   :  { %32 = vrot.lane.b32.xlu0 %v16_v2, %s158_s17  ;;  %v23_v5 = vand.u32 15, %v18_v4  ;;  %v46_v8 = vcombine.low %v16_v2, %v16_v2 }
   0x6   :  { %vm42_vm2 = vcmp.eq.s32.totalorder %v23_v5, 0  ;;  %vm44_vm4 = vcmp.eq.s32.totalorder %v23_v5, 15 }
   0x8   :  { %37 = vrot.lane.b32.xlu0 %v16_v2, %s159_s18 }
  0x76   :  { %v33_v6 = vpop.permute.xlu0 %32 }
  0x77   :  { %v36_v7 = vsel %vm35_vm1, 0.0, %v33_v6 }
  0x78   :  { %v43_v9 = vsel %vm42_vm2, 0.0, %v36_v7 }
  0x79   :  { %v49_v13 = vsel %vm48_vm5, %v43_v9, %v46_v8 }
  0x7a   :  { %v38_v10 = vpop.permute.xlu0 %37 }
  0x7b   :  { %v41_v11 = vsel %vm40_vm3, %v38_v10, 0.0 }
  0x7c   :  { %v45_v12 = vsel %vm44_vm4, 0.0, %v41_v11 }
  0x7d   :  { %v50_v14 = vpack.c.bf16 %v45_v12, %v49_v13 }
  0x7f   :  { %v64_v15 = vsel %vm62_vm6, %v50_v14, 0 }
  0x80   :  { %146 = vmatpush3.bf16.msra.mxu0 %v64_v15 }
  0x83   :  { %148 = vmatmul.mubr.msk.bf16.vlgmr.msra.gmra.mrb[0].mxu0 %vm58_vm7, %v155_v16 }
 0x156   :  { %v100_v17 = vpop.f32.mrb[0].mxu0 }
 0x157   :  { %108 = vst.msk [vmem:[%s214_s2] sm:$0xff] %vm107_vm8, %v100_v17  ;;  %v149_v18 = vpop.f32.mrb[1].mxu0  ;;  %v110_v19 = vsel %vm107_vm8, %v100_v17, 0.0  ;;  %v116_v20 = vmul.f32 %v100_v17, %v100_v17 }
 0x158   :  { %111 = vadd.xlane.f32.xlu1 %v110_v19  ;;  %v103_v21 = vpop.f32.mrb[2].mxu0 }
 0x159   :  { %109 = vst.msk [vmem:[%s215_s3] sm:$0xff] %vm107_vm8, %v103_v21  ;;  %v150_v22 = vpop.f32.mrb[3].mxu0  ;;  %v118_v23 = vsel %vm107_vm8, %v116_v20, 0.0  ;;  %v113_v24 = vsel %vm107_vm8, %v103_v21, 0.0  ;;  %v117_v25 = vmul.f32 %v103_v21, %v103_v21 }
 0x15a   :  { %119 = vadd.xlane.f32.xlu0 %v118_v23 }
 0x15b   :  { %v121_v26 = vsel %vm107_vm8, %v117_v25, 0.0 }
 0x15c   :  { %114 = vadd.xlane.f32.xlu1 %v113_v24 }
 0x160   :  { %122 = vadd.xlane.f32.xlu1 %v121_v26 }
 0x1e5   :  { %v112_v27 = vpop.xlane.xlu1 %111 }
 0x1e7   :  { %v120_v28 = vpop.xlane.xlu0 %119 }
 0x1e8   :  { %v124_v29 = vsel %vm35_vm1, %v112_v27, %v120_v28 }
 0x1e9   :  { %127 = vst.msk [vmem:[%s216_s4] sm:$0xff] %vm126_vm9, %v124_v29  ;;  %v115_v30 = vpop.xlane.xlu1 %114 }
 0x1ed   :  { %v123_v31 = vpop.xlane.xlu1 %122 }
 0x1ee   :  { %v125_v32 = vsel %vm35_vm1, %v115_v30, %v123_v31 }
 0x1ef   :  { %128 = vst.msk [vmem:[%s216_s4 + $0x8] sm:$0xff] %vm126_vm9, %v125_v32 }

</bundles_post_ra>
